<compile_context>
chip_gen: v5e
topology: v5e:2x2
jax: 0.10.0
libtpu: 0.0.40
codegen_flags: <defaults>
</compile_context>

<pallas_src>
import functools

import jax
import jax.numpy as jnp
from jax.experimental import pallas as pl
from jax.experimental.pallas import tpu as pltpu

_NEG_BIAS = -1e30  # bias for padded softmax columns -> exp underflows to exactly 0


def _round_up(x, m):
    return (x + m - 1) // m * m


def _decoder_kernel(ng_p, gs_p, no_p, has_r, approx_recip,
                    z_ref, lib_ref, glib_ref,
                    wpd_ref, bpd_ref, wh_ref, bh_ref,
                    scale_ref, rate_ref, dropout_ref, *r_refs):
    mm_dtype = wpd_ref.dtype

    # px_decoder: Linear -> ReLU  (BN/LN disabled, dropout=0 in myDecoderSCVI defaults)
    z = z_ref[...].astype(mm_dtype)
    px = jnp.dot(z, wpd_ref[...], preferred_element_type=jnp.float32) + bpd_ref[...]
    px = jnp.maximum(px, 0.0)

    # fused heads: ONE MXU matmul; lane-aligned column segments
    #   [scale (ng_p) | geneset (gs_p) | dropout (no_p) | r (no_p, optional)]
    heads = jnp.dot(px.astype(mm_dtype), wh_ref[...],
                    preferred_element_type=jnp.float32) + bh_ref[...]

    dropout_ref[...] = heads[:, ng_p + gs_p:ng_p + gs_p + no_p]
    if has_r:
        r_refs[0][...] = heads[:, ng_p + gs_p + no_p:]

    # gene-segment softmax (padded columns carry bias -1e30 -> contribute exactly 0)
    gene_logits = heads[:, :ng_p]
    gm = jnp.max(gene_logits, axis=-1, keepdims=True)
    ge = jnp.exp(gene_logits - gm)
    ginv = pl.reciprocal(jnp.sum(ge, axis=-1, keepdims=True), approx=approx_recip)
    scale_ref[...] = ge * ginv                                  # softmax(scale)
    rate_ref[:, :ng_p] = ge * (jnp.exp(lib_ref[...]) * ginv)    # exp(library) * px_scale

    # geneset-segment softmax
    gset_logits = heads[:, ng_p:ng_p + gs_p]
    sm = jnp.max(gset_logits, axis=-1, keepdims=True)
    se = jnp.exp(gset_logits - sm)
    sinv = pl.reciprocal(jnp.sum(se, axis=-1, keepdims=True), approx=approx_recip)
    rate_ref[:, ng_p:ng_p + gs_p] = se * (jnp.exp(glib_ref[...]) * sinv)  # g


def my_decoder_scvi_forward(dispersion, z, library, glibrary, params, *,
                            geneset_len, batch_tile=128,
                            matmul_dtype=jnp.bfloat16,
                            approx_reciprocal=True):
    z = jnp.asarray(z, jnp.float32)
    b, n_input = z.shape
    library = jnp.asarray(library, jnp.float32).reshape(b, 1)
    glibrary = jnp.asarray(glibrary, jnp.float32).reshape(b, 1)

    n_hidden = params["w_pd"].shape[1]
    n_output = params["b_do"].shape[-1]
    n_genes = n_output - geneset_len
    if n_genes <= 0 or geneset_len <= 0:
        raise ValueError("both the gene segment and the geneset segment must be non-empty")
    has_r = dispersion == "gene-cell"

    # lane-align every head segment to a multiple of 128 columns
    ng_p = _round_up(n_genes, 128)
    gs_p = _round_up(geneset_len, 128)
    no_p = _round_up(n_output, 128)

    def pad_cols(w, bvec, width, bias_pad):
        pad = width - w.shape[1]
        return (jnp.pad(w, ((0, 0), (0, pad))),
                jnp.pad(bvec, (0, pad), constant_values=bias_pad))

    w_ps, b_ps = pad_cols(params["w_ps"], params["b_ps"], ng_p, _NEG_BIAS)
    w_gs, b_gs = pad_cols(params["w_gs"], params["b_gs"], gs_p, _NEG_BIAS)
    w_do, b_do = pad_cols(params["w_do"], params["b_do"], no_p, 0.0)
    w_list, b_list = [w_ps, w_gs, w_do], [b_ps, b_gs, b_do]
    if has_r:
        w_r, b_r = pad_cols(params["w_r"], params["b_r"], no_p, 0.0)
        w_list.append(w_r)
        b_list.append(b_r)
    w_heads = jnp.concatenate(w_list, axis=1).astype(matmul_dtype)
    b_heads = jnp.concatenate(b_list, axis=0).reshape(1, -1).astype(jnp.float32)
    w_total = w_heads.shape[1]

    w_pd = params["w_pd"].astype(matmul_dtype)
    b_pd = params["b_pd"].reshape(1, -1).astype(jnp.float32)

    # batch tile: multiple of 8 sublanes; cap at ~ceil(b/2) so the grid has >= 2 steps when
    # possible and dimension_semantics=("parallel",) can shard the batch across both v7x cores.
    half = _round_up(max((b + 1) // 2, 1), 8)
    bt = max(8, min(batch_tile, half))
    b_pad = _round_up(b, bt)
    if b_pad != b:
        pad = ((0, b_pad - b), (0, 0))
        z = jnp.pad(z, pad)
        library = jnp.pad(library, pad)
        glibrary = jnp.pad(glibrary, pad)
    grid = (b_pad // bt,)

    # VMEM budget derived from actual block shapes (weights single-buffered, streams x2)
    itemsize = jnp.dtype(matmul_dtype).itemsize
    out_cols = ng_p + (ng_p + gs_p) + no_p + (no_p if has_r else 0)
    weight_bytes = ((n_input * n_hidden + n_hidden * w_total) * itemsize
                    + (n_hidden + w_total) * 4)
    stream_bytes = 2 * bt * (n_input + 2) * 4 + 2 * bt * out_cols * 4
    temp_bytes = bt * (n_hidden + 4 * w_total) * 4   # px / heads / exp / prob temporaries
    need = weight_bytes + stream_bytes + temp_bytes
    try:
        vmem_cap = int(pltpu.get_tpu_info().vmem_capacity_bytes)
    except Exception:
        vmem_cap = 64 * 1024 * 1024
    vmem_limit = int(min(max(need * 5 // 4 + (4 << 20), 32 << 20), vmem_cap - (8 << 20)))

    def row_spec(width):
        return pl.BlockSpec((bt, width), lambda i: (i, 0))

    # weights: whole-array VMEM-resident operands (DMA'd once, single buffer)
    resident = pl.BlockSpec(memory_space=pltpu.MemorySpace.VMEM)

    in_specs = [row_spec(n_input), row_spec(1), row_spec(1),
                resident, resident, resident, resident]
    out_specs = [row_spec(ng_p), row_spec(ng_p + gs_p), row_spec(no_p)]
    out_shape = [jax.ShapeDtypeStruct((b_pad, ng_p), jnp.float32),
                 jax.ShapeDtypeStruct((b_pad, ng_p + gs_p), jnp.float32),
                 jax.ShapeDtypeStruct((b_pad, no_p), jnp.float32)]
    if has_r:
        out_specs.append(row_spec(no_p))
        out_shape.append(jax.ShapeDtypeStruct((b_pad, no_p), jnp.float32))

    outs = pl.pallas_call(
        functools.partial(_decoder_kernel, ng_p, gs_p, no_p, has_r, approx_reciprocal),
        grid=grid,
        in_specs=in_specs,
        out_specs=tuple(out_specs),
        out_shape=tuple(out_shape),
        compiler_params=pltpu.CompilerParams(
            dimension_semantics=("parallel",),
            vmem_limit_bytes=vmem_limit),
    )(z, library, glibrary, w_pd, b_pd, w_heads, b_heads)

    scale_out, rate_out, dropout_out = outs[0], outs[1], outs[2]
    px_scale = scale_out[:b, :n_genes]
    px_dropout = dropout_out[:b, :n_output]
    g = rate_out[:b, ng_p:ng_p + geneset_len]
    if ng_p == n_genes:
        px_rate = rate_out[:b, :n_genes + geneset_len]
    else:
        px_rate = jnp.concatenate([rate_out[:b, :n_genes], g], axis=1)
    px_r = outs[3][:b, :n_output] if has_r else None
    return px_scale, px_r, px_rate, px_dropout, g


def make_params(key, n_input, n_hidden, n_output, geneset_len):
    """Deterministic synthetic parameters (torch-like uniform init for Linear)."""
    def linear(k, n_in, n_out):
        k1, k2 = jax.random.split(k)
        bound = 1.0 / jnp.sqrt(n_in)
        w = jax.random.uniform(k1, (n_in, n_out), jnp.float32, -bound, bound)
        bb = jax.random.uniform(k2, (n_out,), jnp.float32, -bound, bound)
        return w, bb

    n_genes = n_output - geneset_len
    keys = jax.random.split(key, 5)
    p = {}
    p["w_pd"], p["b_pd"] = linear(keys[0], n_input, n_hidden)
    p["w_ps"], p["b_ps"] = linear(keys[1], n_hidden, n_genes)
    p["w_gs"], p["b_gs"] = linear(keys[2], n_hidden, geneset_len)
    p["w_do"], p["b_do"] = linear(keys[3], n_hidden, n_output)
    p["w_r"], p["b_r"] = linear(keys[4], n_hidden, n_output)
    return p


def _reference(dispersion, z, library, glibrary, params, geneset_len):
    """Pure-JAX reference of the same forward (sanity check)."""
    b = z.shape[0]
    library = library.reshape(b, 1)
    glibrary = glibrary.reshape(b, 1)
    px = jnp.maximum(z @ params["w_pd"] + params["b_pd"], 0.0)
    px_scale = jax.nn.softmax(px @ params["w_ps"] + params["b_ps"], axis=-1)
    g_scale = jax.nn.softmax(px @ params["w_gs"] + params["b_gs"], axis=-1)
    px_dropout = px @ params["w_do"] + params["b_do"]
    px_rate = jnp.exp(library) * px_scale
    g = jnp.exp(glibrary) * g_scale
    px_rate = jnp.concatenate([px_rate, g], axis=1)
    px_r = (px @ params["w_r"] + params["b_r"]) if dispersion == "gene-cell" else None
    return px_scale, px_r, px_rate, px_dropout, g


if __name__ == "__main__":
    b = 8
    n_input = 16        # latent dim (z)
    n_hidden = 32
    n_output = 48       # total output genes (incl. geneset block)
    geneset_len = 16

    key = jax.random.PRNGKey(0)
    kz, kl, kg, kp = jax.random.split(key, 4)
    z = jax.random.normal(kz, (b, n_input), jnp.float32)
    library = jax.random.normal(kl, (b, 1), jnp.float32)
    glibrary = jax.random.normal(kg, (b, 1), jnp.float32)
    params = make_params(kp, n_input, n_hidden, n_output, geneset_len)

    names = ["px_scale", "px_r", "px_rate", "px_dropout", "g"]

    # default fast path: bf16 matmuls + approx reciprocal, dispersion='gene-cell'
    outs = my_decoder_scvi_forward("gene-cell", z, library, glibrary, params,
                                   geneset_len=geneset_len)
    jax.block_until_ready(outs)
    refs = _reference("gene-cell", z, library, glibrary, params, geneset_len)
    for name, o, r in zip(names, outs, refs):
        assert o.shape == r.shape, name
        assert jnp.allclose(o, r, atol=3e-2, rtol=3e-2), name

    # exact path: f32 matmuls, exact reciprocal, dispersion != 'gene-cell' (no r head at all)
    outs32 = my_decoder_scvi_forward("gene", z, library, glibrary, params,
                                     geneset_len=geneset_len,
                                     matmul_dtype=jnp.float32,
                                     approx_reciprocal=False)
    jax.block_until_ready([o for o in outs32 if o is not None])
    refs32 = _reference("gene", z, library, glibrary, params, geneset_len)
    assert outs32[1] is None and refs32[1] is None
    for name, o, r in zip(names, outs32, refs32):
        if o is None:
            continue
        assert o.shape == r.shape, name
        assert jnp.allclose(o, r, atol=1e-4, rtol=1e-4), name

    print("KERNEL_OK")
</pallas_src>

<mosaic_0001>
module attributes {stable_mosaic.version = 11 : i64} {
  func.func @_decoder_kernel(%arg0: i32, %arg1: memref<8x16xf32, #tpu.memory_space<vmem>>, %arg2: memref<8x1xf32, #tpu.memory_space<vmem>>, %arg3: memref<8x1xf32, #tpu.memory_space<vmem>>, %arg4: memref<16x32xbf16, #tpu.memory_space<vmem>>, %arg5: memref<1x32xf32, #tpu.memory_space<vmem>>, %arg6: memref<32x512xbf16, #tpu.memory_space<vmem>>, %arg7: memref<1x512xf32, #tpu.memory_space<vmem>>, %arg8: memref<8x128xf32, #tpu.memory_space<vmem>>, %arg9: memref<8x256xf32, #tpu.memory_space<vmem>>, %arg10: memref<8x128xf32, #tpu.memory_space<vmem>>, %arg11: memref<8x128xf32, #tpu.memory_space<vmem>>) attributes {dimension_semantics = [#tpu.dimension_semantics<parallel>], iteration_bounds = array<i64: 1>, scalar_prefetch = 0 : i64, scratch_operands = 0 : i64, tpu.core_type = #tpu.core_type<tc>, window_params = [{transform_indices = @transform_0, window_bounds = array<i64: 8, 16>}, {transform_indices = @transform_1, window_bounds = array<i64: 8, 1>}, {transform_indices = @transform_2, window_bounds = array<i64: 8, 1>}, {pipeline_mode = #tpu.pipeline_mode<synchronous>, transform_indices = @transform_3, window_bounds = array<i64: 16, 32>}, {pipeline_mode = #tpu.pipeline_mode<synchronous>, transform_indices = @transform_4, window_bounds = array<i64: 1, 32>}, {pipeline_mode = #tpu.pipeline_mode<synchronous>, transform_indices = @transform_5, window_bounds = array<i64: 32, 512>}, {pipeline_mode = #tpu.pipeline_mode<synchronous>, transform_indices = @transform_6, window_bounds = array<i64: 1, 512>}, {transform_indices = @transform_7, window_bounds = array<i64: 8, 128>}, {transform_indices = @transform_8, window_bounds = array<i64: 8, 256>}, {transform_indices = @transform_9, window_bounds = array<i64: 8, 128>}, {transform_indices = @transform_10, window_bounds = array<i64: 8, 128>}]} {
    %c0 = arith.constant 0 : index
    %c0_0 = arith.constant 0 : index
    %0 = vector.load %arg1[%c0, %c0_0] : memref<8x16xf32, #tpu.memory_space<vmem>>, vector<8x16xf32>
    %1 = arith.truncf %0 : vector<8x16xf32> to vector<8x16xbf16>
    %c0_1 = arith.constant 0 : index
    %c0_2 = arith.constant 0 : index
    %2 = vector.load %arg4[%c0_1, %c0_2] : memref<16x32xbf16, #tpu.memory_space<vmem>>, vector<16x32xbf16>
    %cst = arith.constant dense<0.000000e+00> : vector<8x32xf32>
    %3 = tpu.matmul %1, %2, %cst {dimension_numbers = #tpu.dot_dimension_numbers<[1], [0], [0], [1], [0, 0, 1, 1], [], []>} : vector<8x16xbf16>, vector<16x32xbf16>, vector<8x32xf32> -> vector<8x32xf32>
    %c0_3 = arith.constant 0 : index
    %c0_4 = arith.constant 0 : index
    %4 = vector.load %arg5[%c0_3, %c0_4] : memref<1x32xf32, #tpu.memory_space<vmem>>, vector<1x32xf32>
    %5 = vector.broadcast %4 : vector<1x32xf32> to vector<8x32xf32>
    %6 = arith.addf %3, %5 : vector<8x32xf32>
    %cst_5 = arith.constant 0.000000e+00 : f32
    %7 = vector.broadcast %cst_5 : f32 to vector<8x32xf32>
    %8 = arith.maximumf %6, %7 : vector<8x32xf32>
    %9 = arith.truncf %8 : vector<8x32xf32> to vector<8x32xbf16>
    %c0_6 = arith.constant 0 : index
    %c0_7 = arith.constant 0 : index
    %10 = vector.load %arg6[%c0_6, %c0_7] : memref<32x512xbf16, #tpu.memory_space<vmem>>, vector<32x512xbf16>
    %cst_8 = arith.constant dense<0.000000e+00> : vector<8x512xf32>
    %11 = tpu.matmul %9, %10, %cst_8 {dimension_numbers = #tpu.dot_dimension_numbers<[1], [0], [0], [1], [0, 0, 1, 1], [], []>} : vector<8x32xbf16>, vector<32x512xbf16>, vector<8x512xf32> -> vector<8x512xf32>
    %c0_9 = arith.constant 0 : index
    %c0_10 = arith.constant 0 : index
    %12 = vector.load %arg7[%c0_9, %c0_10] : memref<1x512xf32, #tpu.memory_space<vmem>>, vector<1x512xf32>
    %13 = vector.broadcast %12 : vector<1x512xf32> to vector<8x512xf32>
    %14 = arith.addf %11, %13 : vector<8x512xf32>
    %15 = vector.extract_strided_slice %14 {offsets = [0, 256], sizes = [8, 128], strides = [1, 1]} : vector<8x512xf32> to vector<8x128xf32>
    %c0_11 = arith.constant 0 : index
    %c0_12 = arith.constant 0 : index
    %16 = vector.load %arg10[%c0_11, %c0_12] : memref<8x128xf32, #tpu.memory_space<vmem>>, vector<8x128xf32>
    tpu.vector_store %arg10[%c0_11, %c0_12], %15 {strides = array<i32>} : memref<8x128xf32, #tpu.memory_space<vmem>>, vector<8x128xf32>,
    %17 = vector.extract_strided_slice %14 {offsets = [0, 384], sizes = [8, 128], strides = [1, 1]} : vector<8x512xf32> to vector<8x128xf32>
    %c0_13 = arith.constant 0 : index
    %c0_14 = arith.constant 0 : index
    %18 = vector.load %arg11[%c0_13, %c0_14] : memref<8x128xf32, #tpu.memory_space<vmem>>, vector<8x128xf32>
    tpu.vector_store %arg11[%c0_13, %c0_14], %17 {strides = array<i32>} : memref<8x128xf32, #tpu.memory_space<vmem>>, vector<8x128xf32>,
    %19 = vector.extract_strided_slice %14 {offsets = [0, 0], sizes = [8, 128], strides = [1, 1]} : vector<8x512xf32> to vector<8x128xf32>
    %cst_15 = arith.constant dense<0xFF800000> : vector<8xf32>
    %20 = vector.multi_reduction <maximumf>, %19, %cst_15 [1] : vector<8x128xf32> to vector<8xf32>
    %21 = vector.shape_cast %20 : vector<8xf32> to vector<8x1xf32>
    %22 = vector.broadcast %21 : vector<8x1xf32> to vector<8x128xf32>
    %23 = arith.subf %19, %22 : vector<8x128xf32>
    %24 = math.exp %23 : vector<8x128xf32>
    %cst_16 = arith.constant dense<0.000000e+00> : vector<8xf32>
    %25 = vector.multi_reduction <add>, %24, %cst_16 [1] : vector<8x128xf32> to vector<8xf32>
    %26 = vector.shape_cast %25 : vector<8xf32> to vector<8x1xf32>
    %27 = tpu.reciprocal %26 {approx = true} : vector<8x1xf32> -> vector<8x1xf32>
    %28 = vector.broadcast %27 : vector<8x1xf32> to vector<8x128xf32>
    %29 = arith.mulf %24, %28 : vector<8x128xf32>
    %c0_17 = arith.constant 0 : index
    %c0_18 = arith.constant 0 : index
    %30 = vector.load %arg8[%c0_17, %c0_18] : memref<8x128xf32, #tpu.memory_space<vmem>>, vector<8x128xf32>
    tpu.vector_store %arg8[%c0_17, %c0_18], %29 {strides = array<i32>} : memref<8x128xf32, #tpu.memory_space<vmem>>, vector<8x128xf32>,
    %c0_19 = arith.constant 0 : index
    %c0_20 = arith.constant 0 : index
    %31 = vector.load %arg2[%c0_19, %c0_20] : memref<8x1xf32, #tpu.memory_space<vmem>>, vector<8x1xf32>
    %32 = math.exp %31 : vector<8x1xf32>
    %33 = arith.mulf %32, %27 : vector<8x1xf32>
    %34 = vector.broadcast %33 : vector<8x1xf32> to vector<8x128xf32>
    %35 = arith.mulf %24, %34 : vector<8x128xf32>
    %c0_21 = arith.constant 0 : index
    %c0_22 = arith.constant 0 : index
    %36 = vector.load %arg9[%c0_21, %c0_22] : memref<8x256xf32, #tpu.memory_space<vmem>>, vector<8x128xf32>
    tpu.vector_store %arg9[%c0_21, %c0_22], %35 {strides = array<i32>} : memref<8x256xf32, #tpu.memory_space<vmem>>, vector<8x128xf32>,
    %37 = vector.extract_strided_slice %14 {offsets = [0, 128], sizes = [8, 128], strides = [1, 1]} : vector<8x512xf32> to vector<8x128xf32>
    %cst_23 = arith.constant dense<0xFF800000> : vector<8xf32>
    %38 = vector.multi_reduction <maximumf>, %37, %cst_23 [1] : vector<8x128xf32> to vector<8xf32>
    %39 = vector.shape_cast %38 : vector<8xf32> to vector<8x1xf32>
    %40 = vector.broadcast %39 : vector<8x1xf32> to vector<8x128xf32>
    %41 = arith.subf %37, %40 : vector<8x128xf32>
    %42 = math.exp %41 : vector<8x128xf32>
    %cst_24 = arith.constant dense<0.000000e+00> : vector<8xf32>
    %43 = vector.multi_reduction <add>, %42, %cst_24 [1] : vector<8x128xf32> to vector<8xf32>
    %44 = vector.shape_cast %43 : vector<8xf32> to vector<8x1xf32>
    %45 = tpu.reciprocal %44 {approx = true} : vector<8x1xf32> -> vector<8x1xf32>
    %c0_25 = arith.constant 0 : index
    %c0_26 = arith.constant 0 : index
    %46 = vector.load %arg3[%c0_25, %c0_26] : memref<8x1xf32, #tpu.memory_space<vmem>>, vector<8x1xf32>
    %47 = math.exp %46 : vector<8x1xf32>
    %48 = arith.mulf %47, %45 : vector<8x1xf32>
    %49 = vector.broadcast %48 : vector<8x1xf32> to vector<8x128xf32>
    %50 = arith.mulf %42, %49 : vector<8x128xf32>
    %c0_27 = arith.constant 0 : index
    %c128 = arith.constant 128 : index
    %51 = vector.load %arg9[%c0_27, %c128] : memref<8x256xf32, #tpu.memory_space<vmem>>, vector<8x128xf32>
    tpu.vector_store %arg9[%c0_27, %c128], %50 {strides = array<i32>} : memref<8x256xf32, #tpu.memory_space<vmem>>, vector<8x128xf32>,
    return
  }
  func.func @transform_0(%arg0: i32) -> (i32, i32) {
    %c0_i32 = arith.constant 0 : i32
    %c0_i32_0 = arith.constant 0 : i32
    return %arg0, %c0_i32 : i32, i32
  }
  func.func @transform_1(%arg0: i32) -> (i32, i32) {
    %c0_i32 = arith.constant 0 : i32
    %c0_i32_0 = arith.constant 0 : i32
    return %arg0, %c0_i32 : i32, i32
  }
  func.func @transform_2(%arg0: i32) -> (i32, i32) {
    %c0_i32 = arith.constant 0 : i32
    %c0_i32_0 = arith.constant 0 : i32
    return %arg0, %c0_i32 : i32, i32
  }
  func.func @transform_3(%arg0: i32) -> (i32, i32) {
    %c0_i32 = arith.constant 0 : i32
    %c0_i32_0 = arith.constant 0 : i32
    %c0_i32_1 = arith.constant 0 : i32
    return %c0_i32, %c0_i32_0 : i32, i32
  }
  func.func @transform_4(%arg0: i32) -> (i32, i32) {
    %c0_i32 = arith.constant 0 : i32
    %c0_i32_0 = arith.constant 0 : i32
    %c0_i32_1 = arith.constant 0 : i32
    return %c0_i32, %c0_i32_0 : i32, i32
  }
  func.func @transform_5(%arg0: i32) -> (i32, i32) {
    %c0_i32 = arith.constant 0 : i32
    %c0_i32_0 = arith.constant 0 : i32
    %c0_i32_1 = arith.constant 0 : i32
    return %c0_i32, %c0_i32_0 : i32, i32
  }
  func.func @transform_6(%arg0: i32) -> (i32, i32) {
    %c0_i32 = arith.constant 0 : i32
    %c0_i32_0 = arith.constant 0 : i32
    %c0_i32_1 = arith.constant 0 : i32
    return %c0_i32, %c0_i32_0 : i32, i32
  }
  func.func @transform_7(%arg0: i32) -> (i32, i32) {
    %c0_i32 = arith.constant 0 : i32
    %c0_i32_0 = arith.constant 0 : i32
    return %arg0, %c0_i32 : i32, i32
  }
  func.func @transform_8(%arg0: i32) -> (i32, i32) {
    %c0_i32 = arith.constant 0 : i32
    %c0_i32_0 = arith.constant 0 : i32
    return %arg0, %c0_i32 : i32, i32
  }
  func.func @transform_9(%arg0: i32) -> (i32, i32) {
    %c0_i32 = arith.constant 0 : i32
    %c0_i32_0 = arith.constant 0 : i32
    return %arg0, %c0_i32 : i32, i32
  }
  func.func @transform_10(%arg0: i32) -> (i32, i32) {
    %c0_i32 = arith.constant 0 : i32
    %c0_i32_0 = arith.constant 0 : i32
    return %arg0, %c0_i32 : i32, i32
  }
}

</mosaic_0001>

<bundles_post_ra>
// kernel: tpu_custom_call.1
= control target key start
LH: loop header
LB: loop body
LE: loop exit
PB: predicated region body
PF: predicated region fallthrough
CT: control target
= control target key end

     0   :  { %16 = vsyncpa [#allocation3], 0  ;;  %s643_s0 = inlined_call_operand.vmem [shape: f32[8,16], index: 0, kind: input, shape index: {}]   ;;  %s644_s1 = inlined_call_operand.vmem [shape: f32[8,1], index: 1, kind: input, shape index: {}]   ;;  %s645_s2 = inlined_call_operand.vmem [shape: f32[8,1], index: 2, kind: input, shape index: {}]   ;;  %s646_s3 = inlined_call_operand.vmem [shape: bf16[16,32], index: 3, kind: input, shape index: {}]   ;;  %s647_s4 = inlined_call_operand.hbm [shape: f32[1,32], index: 4, kind: input, shape index: {}]   ;;  %s648_s5 = inlined_call_operand.hbm [shape: bf16[32,512], index: 5, kind: input, shape index: {}]   ;;  %s649_s6 = inlined_call_operand.vmem [shape: f32[1,512], index: 6, kind: input, shape index: {}]   ;;  %s650_s7 = inlined_call_operand.hbm [shape: f32[8,128], index: 7, kind: output, shape index: {0}]   ;;  %s651_s8 = inlined_call_operand.hbm [shape: f32[8,256], index: 8, kind: output, shape index: {1}]   ;;  %s652_s9 = inlined_call_operand.hbm [shape: f32[8,128], index: 9, kind: output, shape index: {2}]   ;;  %s653_s10 = inlined_call_operand.hbm [shape: f32[8,128], index: 10, kind: output, shape index: {3}]  }
   0x1   :  { %17 = vsyncpa [#allocation6], 0 }
   0x2   :  { %18 = vsyncpa [#allocation4], 0 }
   0x3   :  { %19 = vsyncpa [#allocation9], 0 }
   0x4   :  { %20 = vsyncpa [#allocation12], 0  ;;  %s34_s15 = sshll.u32 %s647_s4, 4  ;;  %s546_s16 = smov [#allocation2]   ;;  %s35_s15 = int_to_ptr.hbm [resolvable:$true] %s34_s15 }
   0x5   :  { %s36_s17 = sshll.u32 %s546_s16, 4  ;;  %s44_s20 = sshll.u32 %s648_s5, 4  ;;  %s37_s17 = int_to_ptr.vmem [resolvable:$true] %s36_s17  ;;  %s45_s20 = int_to_ptr.hbm [resolvable:$true] %s44_s20 }
   0x6   :  { %39 = dma.hbm_to_vmem [thread:$0]  %s35_s15, 16, %s37_s17, [#allocation3]  }
   0x7   :  { %s547_s21 = smov [#allocation5]   ;;  %s548_s23 = smov 256  }
   0x8   :  { %s46_s22 = sshll.u32 %s547_s21, 4  ;;  %s549_s24 = smov 16   ;;  %s47_s22 = int_to_ptr.vmem [resolvable:$true] %s46_s22 }
   0x9   :  { %52 = dma.hbm_to_vmem [thread:$0]  %s45_s20, 1024, %s47_s22, [#allocation6], %s548_s23, %s548_s23, %s549_s24  }
   0xa   :  { %536 = dma.done.wait [#allocation3], 16  }
   0xb   :  { %537 = vsyncadd [#allocation3], 4294967280 }
   0xc   :  { %538 = dma.done.wait [#allocation6], 1024  }
   0xd   :  { %539 = vsyncadd [#allocation6], 4294966272  ;;  %v359_v0 = vld [vmem:[%s646_s3] sm:$0xff]  ;;  %vm78_vm0 = vcmask 130048   ;;  %v366_v4 = vld [vmem:[#allocation5 + $0x2c] sm:$0xf0] }
   0xe   :  { %v64_v1 = vld [vmem:[%s643_s0] sm:$0xff]  ;;  %89 = vmatpush.bf16.msra.mxu0 %v359_v0  ;;  %v343_v7 = vld [vmem:[#allocation5 + $0x30] sm:$0xf0]  ;;  %v349_v8 = vld [vmem:[#allocation5 + $0x28] sm:$0xf]  ;;  %vm155_vm1 = vcmask 261120  }
   0xf   :  { %v65_v2 = vpack.c.bf16 %v64_v1, %v64_v1  ;;  %v341_v3 = vld [vmem:[#allocation5 + $0x20] sm:$0xf]  ;;  %v364_v5 = vld [vmem:[#allocation5 + $0x24] sm:$0xf]  ;;  %v367_v9 = vld [vmem:[#allocation5 + $0x34] sm:$0xf0] }
  0x10   :  { %v342_v6 = vor.u32 %v366_v4, %v341_v3  ;;  %v346_v10 = vor.u32 %v364_v5, %v343_v7  ;;  %v350_v11 = vor.u32 %v367_v9, %v349_v8  ;;  %v365_v12 = vld [vmem:[#allocation5 + $0x2c] sm:$0xf]  ;;  %v351_v13 = vld [vmem:[#allocation5 + $0x38] sm:$0xf0]  ;;  %v325_v15 = vld [vmem:[#allocation5] sm:$0xf] }
  0x11   :  { %322 = vmatmul.msk.bf16.vlgmr.msra.gmra.mxu0 %vm78_vm0, %v65_v2  ;;  %v354_v14 = vor.u32 %v365_v12, %v351_v13  ;;  %v362_v16 = vld [vmem:[#allocation5 + $0xc] sm:$0xf0]  ;;  %v360_v17 = vld [vmem:[#allocation5 + $0x4] sm:$0xf]  ;;  %v327_v19 = vld [vmem:[#allocation5 + $0x10] sm:$0xf0] }
  0x12   :  { %165 = vmatpush.bf16.msra.mxu1 %v342_v6  ;;  %178 = vmatpush.bf16.msra.mxu2 %v346_v10  ;;  %v326_v18 = vor.u32 %v362_v16, %v325_v15  ;;  %v333_v20 = vld [vmem:[#allocation5 + $0x8] sm:$0xf]  ;;  %v363_v21 = vld [vmem:[#allocation5 + $0x14] sm:$0xf0]  ;;  %v330_v22 = vor.u32 %v360_v17, %v327_v19  ;;  %v361_v24 = vld [vmem:[#allocation5 + $0xc] sm:$0xf] }
  0x13   :  { %191 = vmatpush.bf16.msra.mxu3 %v350_v11  ;;  %204 = vmatpush.bf16.msrb.mxu0 %v354_v14  ;;  %v334_v23 = vor.u32 %v363_v21, %v333_v20  ;;  %v335_v25 = vld [vmem:[#allocation5 + $0x18] sm:$0xf0]  ;;  %v550_v58 = vmov 0   ;;  %s293_s28 = sshll.u32 %s653_s10, 4  ;;  %s551_s29 = smov [#allocation11]   ;;  %s294_s28 = int_to_ptr.hbm [resolvable:$true] %s293_s28 }
  0x14   :  { %v338_v26 = vor.u32 %v361_v24, %v335_v25  ;;  %v379_v27 = vld [vmem:[#allocation2] ss:$0 sm:$0xff]  ;;  %377 = vset.pattern.permute.xlu2 %v550_v58  ;;  %378 = vset.pattern.permute.xlu0 %v550_v58  ;;  %s291_s30 = sshll.u32 %s551_s29, 4  ;;  %s552_s10 = smov [#allocation7]   ;;  %s292_s30 = int_to_ptr.vmem [resolvable:$true] %s291_s30 }
  0x15   :  { %v105_v33 = vld [vmem:[%s649_s6] sm:$0xf]  ;;  %s258_s15 = sshll.u32 %s552_s10, 4  ;;  %s260_s18 = sshll.u32 %s650_s7, 4  ;;  %s259_s15 = int_to_ptr.vmem [resolvable:$true] %s258_s15  ;;  %s261_s18 = int_to_ptr.hbm [resolvable:$true] %s260_s18 }
  0x16   :  { %166 = vmatpush.bf16.msra.mxu1 %v326_v18  ;;  %179 = vmatpush.bf16.msra.mxu2 %v330_v22  ;;  %v107_v34 = vperm.slane %v105_v33, 0  ;;  %v110_v35 = vperm.slane %v105_v33, 3  ;;  %v109_v40 = vperm.slane %v105_v33, 2  ;;  %v108_v41 = vperm.slane %v105_v33, 1  ;;  %v223_v59 = vld [vmem:[%s644_s1] sm:$0xff]  ;;  %s553_s1 = smov [#allocation8]  }
  0x17   :  { %192 = vmatpush.bf16.msra.mxu3 %v334_v23  ;;  %205 = vmatpush.bf16.msrb.mxu0 %v338_v26  ;;  %v224_v60 = vmul.f32 1.442695, %v223_v59  ;;  %v242_v62 = vld [vmem:[%s645_s2] sm:$0xff]  ;;  %s269_s2 = sshll.u32 %s553_s1, 4  ;;  %s271_s20 = sshll.u32 %s651_s8, 4  ;;  %s270_s2 = int_to_ptr.vmem [resolvable:$true] %s269_s2  ;;  %s272_s20 = int_to_ptr.hbm [resolvable:$true] %s271_s20 }
  0x18   :  { %v243_v63 = vmul.f32 1.442695, %v242_v62  ;;  %s554_s21 = smov [#allocation10]   ;;  %s282_s4 = sshll.u32 %s652_s9, 4  ;;  %s283_s4 = int_to_ptr.hbm [resolvable:$true] %s282_s4 }
  0x19   :  { %s280_s22 = sshll.u32 %s554_s21, 4  ;;  %s281_s22 = int_to_ptr.vmem [resolvable:$true] %s280_s22 }
  0x8e   :  { %v91_v28 = vpop.f32.mrf.mxu0 }
  0x8f   :  { %v92_v29 = vadd.f32 %v379_v27, %v91_v28 }
  0x91   :  { %v95_v30 = vmax.f32 %v92_v29, 0.0 }
  0x93   :  { %v96_v31 = vpack.c.bf16 %v95_v30, %v95_v30 }
  0x95   :  { %355 = vmatmul.msk.bf16.vlgmr.msra.gmra.mxu1 %vm155_vm1, %v96_v31  ;;  %356 = vmatmul.msk.bf16.vlgmr.msra.gmra.mxu2 %vm155_vm1, %v96_v31 }
  0x96   :  { %357 = vmatmul.msk.bf16.vlgmr.msra.gmra.mxu3 %vm155_vm1, %v96_v31  ;;  %358 = vmatmul.msk.bf16.vlgmr.msrb.gmra.mxu0 %vm155_vm1, %v96_v31  ;;  %v93_v32 = vpop.f32.mrf.mxu0 }
 0x112   :  { %v168_v36 = vpop.f32.mrf.mxu1 }
 0x113   :  { %v169_v37 = vadd.f32 %v168_v36, %v107_v34  ;;  %v207_v38 = vpop.f32.mrf.mxu0 }
 0x114   :  { %v208_v39 = vadd.f32 %v207_v38, %v110_v35 }
 0x115   :  { %213 = vmax.xlane.f32.xlu0 %v169_v37 }
 0x116   :  { %212 = vst [vmem:[#allocation11] sm:$0xff] %v208_v39 }
 0x117   :  { %296 = dma.vmem_to_hbm [thread:$0]  %s292_s30, 128, %s294_s28, [#allocation12]  }
 0x118   :  { %v181_v42 = vpop.f32.mrf.mxu2 }
 0x119   :  { %v194_v43 = vpop.f32.mrf.mxu3  ;;  %v182_v46 = vadd.f32 %v181_v42, %v108_v41 }
 0x11a   :  { %v195_v44 = vadd.f32 %v194_v43, %v109_v40  ;;  %v170_v45 = vpop.f32.mrf.mxu1 }
 0x11b   :  { %v209_v47 = vpop.f32.mrf.mxu0 }
 0x11c   :  { %211 = vst [vmem:[#allocation10] sm:$0xff] %v195_v44 }
 0x11d   :  { %234 = vmax.xlane.f32.xlu0 %v182_v46 }
 0x120   :  { %v183_v48 = vpop.f32.mrf.mxu2 }
 0x121   :  { %v196_v49 = vpop.f32.mrf.mxu3 }
 0x188   :  { %v214_v50 = vpop.xlane.xlu0 %213 }
 0x189   :  { %v215_v51 = vsub.f32 %v169_v37, %v214_v50 }
 0x18b   :  { %v216_v52 = vmul.f32 1.442695, %v215_v51 }
 0x18d   :  { %380 = vpow2.f32 %v216_v52 }
 0x190   :  { %v235_v53 = vpop.xlane.xlu0 %234 }
 0x191   :  { %v236_v54 = vsub.f32 %v182_v46, %v235_v53 }
 0x193   :  { %v381_v55 = vpop.eup %380  ;;  %v237_v56 = vmul.f32 1.442695, %v236_v54 }
 0x194   :  { %218 = vadd.xlane.f32.xlu1 %v381_v55 }
 0x195   :  { %382 = vpow2.f32 %v237_v56 }
 0x196   :  { %384 = vpow2.f32 %v224_v60 }
 0x19b   :  { %v383_v57 = vpop.eup %382 }
 0x19c   :  { %239 = vadd.xlane.f32.xlu1 %v383_v57  ;;  %v385_v0 = vpop.eup %384 }
 0x207   :  { %v219_v61 = vpop.xlane.xlu1 %218 }
 0x208   :  { %386 = vrcp.f32 %v219_v61 }
 0x209   :  { %388 = vpow2.f32 %v243_v63 }
 0x20e   :  { %v387_v1 = vpop.eup %386 }
 0x20f   :  { %v240_v2 = vpop.xlane.xlu1 %239  ;;  %v226_v3 = vmul.f32 %v387_v1, %v385_v0  ;;  %v221_v4 = vmul.f32 %v387_v1, %v381_v55  ;;  %v389_v5 = vpop.eup %388 }
 0x210   :  { %390 = vrcp.f32 %v240_v2 }
 0x211   :  { %229 = vperm.xlu2 %377, %v226_v3   ;;  %222 = vst [vmem:[#allocation7] sm:$0xff] %v221_v4 }
 0x212   :  { %263 = dma.vmem_to_hbm [thread:$0]  %s259_s15, 128, %s261_s18, [#allocation4]  }
 0x216   :  { %v391_v6 = vpop.eup %390 }
 0x217   :  { %v245_v7 = vmul.f32 %v391_v6, %v389_v5 }
 0x219   :  { %248 = vperm.xlu2 %377, %v245_v7  }
 0x26b   :  { %v230_v8 = vpop.permute.xlu2 %229 }
 0x26c   :  { %v232_v9 = vmul.f32 %v381_v55, %v230_v8 }
 0x26e   :  { %233 = vst [vmem:[#allocation8] sm:$0xff] %v232_v9 }
 0x273   :  { %v249_v10 = vpop.permute.xlu2 %248 }
 0x274   :  { %v251_v11 = vmul.f32 %v383_v57, %v249_v10 }
 0x276   :  { %252 = vst [vmem:[#allocation8 + $0x8] sm:$0xff] %v251_v11 }
 0x277   :  { %274 = dma.vmem_to_hbm [thread:$0]  %s270_s2, 256, %s272_s20, [#allocation9]  }
 0x278   :  { %285 = dma.vmem_to_hbm [thread:$0]  %s281_s22, 128, %s283_s4, [#allocation9]  }
 0x279   :  { %540 = dma.done.wait [#allocation4], 128  }
 0x27a   :  { %541 = vsyncadd [#allocation4], 4294967168 }
 0x27b   :  { %542 = dma.done.wait [#allocation9], 384  }
 0x27c   :  { %543 = vsyncadd [#allocation9], 4294966912 }
 0x27d   :  { %544 = dma.done.wait [#allocation12], 128  }
 0x27e   :  { %545 = vsyncadd [#allocation12], 4294967168 }
 0x27f   :  { %313 = vsyncpa [#allocation3], 1 }
 0x280   :  { %314 = vsyncpa [#allocation6], 1 }
 0x281   :  { %315 = vsyncpa [#allocation4], 1 }
 0x282   :  { %316 = vsyncpa [#allocation9], 1 }
 0x283   :  { %317 = vsyncpa [#allocation12], 1 }

</bundles_post_ra>
